<compile_context>
chip_gen: v7x
topology: tpu7x:2x2x1
jax: 0.10.0
libtpu: 0.0.40
codegen_flags: <defaults>
</compile_context>

<pallas_src>
import jax
import jax.numpy as jnp
from jax.experimental import pallas as pl
from jax.experimental.pallas import tpu as pltpu

LANE = 128


def round_up(v, m):
    return (v + m - 1) // m * m


def _cdiv(a, b):
    return -(-a // b)


# ----------------------------------------------------------------------------
# Kernel: full sliced-MLP chain on one (F, TILE_M) slab per grid step.
# ----------------------------------------------------------------------------
def make_mlp_kernel(n_layers):
    def kernel(*refs):
        x_ref = refs[0]
        o_ref = refs[-1]
        p_refs = refs[1:-1]                      # interleaved: w0, b0, w1, b1, ...
        y = x_ref[...]                           # (f_in, tile_m)  bf16
        for i in range(n_layers):
            w = p_refs[2 * i][...]               # (out_i, in_i)   bf16
            b = p_refs[2 * i + 1][...]           # (out_i, 1)      f32
            acc = jnp.dot(w, y, preferred_element_type=jnp.float32) + b
            if i < n_layers - 1:
                acc = jnp.maximum(acc, 0.0)      # ReLU in f32 (dropout_p=0, layernorm=False)
                y = acc.astype(jnp.bfloat16)     # bf16 for the next MXU dot
            else:
                o_ref[...] = acc.astype(o_ref.dtype)   # final layer stays f32
    return kernel


# ----------------------------------------------------------------------------
# M-axis tiling: lane-dense tiles, big enough to amortize grid-step overhead.
# ----------------------------------------------------------------------------
def _choose_m_tiling(M, target):
    """Pick (tile_m, grid_m): tile_m a multiple of 128 (lane-dense, unmasked
    stores), sized toward `target`, and grid_m >= 2 once there is enough work
    so the 'parallel' M axis can shard across both TensorCores on v7x."""
    m128 = round_up(max(M, 1), LANE)
    if m128 <= 4 * LANE:                  # tiny problem: one lane-dense tile
        return m128, 1
    n = max(2, _cdiv(m128, target))
    tile_m = round_up(_cdiv(M, n), LANE)
    return tile_m, _cdiv(m128, tile_m)


# ----------------------------------------------------------------------------
# One-time parameter prep: weights stay in PyTorch (out, in) layout (exactly the
# orientation the kernel wants), cast to bf16; biases as (out, 1) f32 columns.
# ----------------------------------------------------------------------------
def prepare_params(Ws, bs):
    params = []
    for W, b in zip(Ws, bs):
        params.append(jnp.asarray(W, jnp.bfloat16))                 # (out_i, in_i)
        params.append(jnp.asarray(b, jnp.float32).reshape(-1, 1))   # (out_i, 1)
    return params


# ----------------------------------------------------------------------------
# Wrapper: PyTorch (B, F, S) layout in/out; kernel works on (F, M=B*S) slabs.
# ----------------------------------------------------------------------------
def varlen_mlp_up_pallas(x_bfs, params, *, tile_m_target=1024,
                         const_single_buffer=True):
    B, f_in, S = x_bfs.shape
    n_layers = len(params) // 2
    assert params[0].shape[1] == f_in
    layer_dims = [f_in] + [int(params[2 * i].shape[0]) for i in range(n_layers)]
    out_dim = layer_dims[-1]

    M = B * S
    tile_m, grid_m = _choose_m_tiling(M, tile_m_target)
    M_pad = tile_m * grid_m

    # Single fused layout pass: (B, F, S) -> (F, B*S), cast to bf16, zero-pad
    # only the M (lane) axis.  Feature dims stay unpadded.
    x_fm = jnp.transpose(x_bfs, (1, 0, 2)).reshape(f_in, M).astype(jnp.bfloat16)
    if M_pad != M:
        x_fm = jnp.pad(x_fm, ((0, 0), (0, M_pad - M)))

    # Constant-index weight/bias blocks: fetched once; single-buffered when the
    # JAX build supports pipeline_mode (halves their VMEM reservation).
    if const_single_buffer:
        def const_spec(shape):
            return pl.BlockSpec(shape, lambda i: (0, 0), pipeline_mode=pl.Buffered(1))
    else:
        def const_spec(shape):
            return pl.BlockSpec(shape, lambda i: (0, 0))

    in_specs = [pl.BlockSpec((f_in, tile_m), lambda i: (0, i))]
    for li in range(n_layers):
        dout, din = params[2 * li].shape
        in_specs.append(const_spec((dout, din)))
        in_specs.append(const_spec((dout, 1)))

    # Honest cost estimate: bytes the kernel actually moves (bf16 acts/weights,
    # f32 biases/output, M padded; constant weight blocks fetched once).
    mac = sum(layer_dims[i] * layer_dims[i + 1] for i in range(n_layers))
    w_bytes = sum(int(p.size) * p.dtype.itemsize for p in params)
    bytes_accessed = f_in * M_pad * 2 + w_bytes + out_dim * M_pad * 4
    flops = 2 * M_pad * mac

    # Per-TC VMEM budget (v7x: 64 MiB physical / 32 MiB scoped default;
    # v5e default is only 16 MiB, so set it explicitly).
    act_bytes = 2 * tile_m * (f_in * 2 + out_dim * 4)        # in/out blocks, double-buffered
    act_bytes += 2 * tile_m * max(layer_dims) * 4            # f32 intermediates headroom
    wb_factor = 1 if const_single_buffer else 2
    vmem_limit = int(min(64 << 20, max(32 << 20, 3 * (act_bytes + wb_factor * w_bytes))))

    out = pl.pallas_call(
        make_mlp_kernel(n_layers),
        out_shape=jax.ShapeDtypeStruct((out_dim, M_pad), jnp.float32),
        grid_spec=pltpu.PrefetchScalarGridSpec(
            num_scalar_prefetch=0,
            grid=(grid_m,),
            in_specs=in_specs,
            out_specs=pl.BlockSpec((out_dim, tile_m), lambda i: (0, i)),
        ),
        compiler_params=pltpu.CompilerParams(
            dimension_semantics=("parallel",),
            vmem_limit_bytes=vmem_limit,
        ),
        cost_estimate=pl.CostEstimate(
            flops=flops, transcendentals=0, bytes_accessed=bytes_accessed),
    )(x_fm, *params)

    # (out_dim, M_pad) -> (B, out_dim, S): one fused slice/reshape/transpose pass.
    y = out[:, :M].reshape(out_dim, B, S)
    return jnp.transpose(y, (1, 0, 2))


# ----------------------------------------------------------------------------
# Glue: deterministic parameter construction + the variable-length slicing that
# VarLenMLPup.forward performs (pure indexing, kept in plain JAX).
# ----------------------------------------------------------------------------
def build_full_params(key, insize, layers_n_nodes):
    Ws, bs = [], []
    in_dims = [insize] + layers_n_nodes[:-1]
    for din, dout in zip(in_dims, layers_n_nodes):
        key, kw, kb = jax.random.split(key, 3)
        Ws.append(jax.random.normal(kw, (dout, din), jnp.float32) * 0.1)
        bs.append(jax.random.normal(kb, (dout,), jnp.float32) * 0.1)
    return Ws, bs


def slice_params(full_Ws, full_bs, insize, layers_sizes, L):
    """layers_sizes already includes the trailing 1 (as in the module's __init__)."""
    Ws, bs = [], []
    n = len(full_Ws)
    for i in range(n):
        in_size = None if i == 0 else max(insize, int(L * layers_sizes[i - 1]))
        out_size = int(L * layers_sizes[i]) if i == n - 1 else max(insize, int(L * layers_sizes[i]))
        W = full_Ws[i][:out_size] if in_size is None else full_Ws[i][:out_size, :in_size]
        Ws.append(W)
        bs.append(full_bs[i][:out_size])
    return Ws, bs


def reference_forward(x_bfs, Ws, bs):
    """f32 reference matching the PyTorch forward."""
    y = jnp.transpose(x_bfs, (0, 2, 1))
    for i, (W, b) in enumerate(zip(Ws, bs)):
        y = y @ W.T + b
        if i < len(Ws) - 1:
            y = jnp.maximum(y, 0.0)
    return jnp.transpose(y, (0, 2, 1))


if __name__ == "__main__":
    # Module config: max_size=16, insize=8, layers_sizes=[2.0, 1.5] (+[1]),
    # activation=ReLU, dropout_p=0, layernorm=False, current_L=12.
    max_size, insize = 16, 8
    layers_sizes = [2.0, 1.5] + [1]
    layers_n_nodes = [max(int(max_size * s), insize) for s in layers_sizes]   # [32, 24, 16]
    L = 12
    B, S = 2, 16

    key = jax.random.PRNGKey(0)
    kx, kp = jax.random.split(key)
    x = jax.random.normal(kx, (B, insize, S), jnp.float32)    # PyTorch (B, C=insize, S)

    full_Ws, full_bs = build_full_params(kp, insize, layers_n_nodes)
    Ws, bs = slice_params(full_Ws, full_bs, insize, layers_sizes, L)
    params = prepare_params(Ws, bs)                            # hoisted out of forward

    fwd = jax.jit(varlen_mlp_up_pallas,
                  static_argnames=("tile_m_target", "const_single_buffer"))
    try:
        y = jax.block_until_ready(fwd(x, params))
    except Exception:
        # pipeline_mode=pl.Buffered(1) unsupported on this JAX build -> default buffering.
        y = jax.block_until_ready(fwd(x, params, const_single_buffer=False))

    y_ref = reference_forward(x, Ws, bs)
    assert y.shape == (B, int(L * layers_sizes[-1]), S), y.shape
    # bf16 activations/weights (f32 accumulation) -> loosened tolerance vs f32 reference.
    assert jnp.allclose(y, y_ref, atol=2e-2, rtol=2e-2), \
        float(jnp.max(jnp.abs(y - y_ref)))

    print("KERNEL_OK")
</pallas_src>

<mosaic_0001>
module attributes {stable_mosaic.version = 11 : i64} {
  func.func @kernel(%arg0: i32, %arg1: memref<8x128xbf16, #tpu.memory_space<vmem>>, %arg2: memref<24x8xbf16, #tpu.memory_space<vmem>>, %arg3: memref<24x1xf32, #tpu.memory_space<vmem>>, %arg4: memref<18x24xbf16, #tpu.memory_space<vmem>>, %arg5: memref<18x1xf32, #tpu.memory_space<vmem>>, %arg6: memref<12x18xbf16, #tpu.memory_space<vmem>>, %arg7: memref<12x1xf32, #tpu.memory_space<vmem>>, %arg8: memref<12x128xf32, #tpu.memory_space<vmem>>) attributes {dimension_semantics = [#tpu.dimension_semantics<parallel>], iteration_bounds = array<i64: 1>, scalar_prefetch = 0 : i64, scratch_operands = 0 : i64, tpu.core_type = #tpu.core_type<tc>, window_params = [{transform_indices = @transform_0, window_bounds = array<i64: 8, 128>}, {pipeline_mode = #tpu.pipeline_mode<synchronous>, transform_indices = @transform_1, window_bounds = array<i64: 24, 8>}, {pipeline_mode = #tpu.pipeline_mode<synchronous>, transform_indices = @transform_2, window_bounds = array<i64: 24, 1>}, {pipeline_mode = #tpu.pipeline_mode<synchronous>, transform_indices = @transform_3, window_bounds = array<i64: 18, 24>}, {pipeline_mode = #tpu.pipeline_mode<synchronous>, transform_indices = @transform_4, window_bounds = array<i64: 18, 1>}, {pipeline_mode = #tpu.pipeline_mode<synchronous>, transform_indices = @transform_5, window_bounds = array<i64: 12, 18>}, {pipeline_mode = #tpu.pipeline_mode<synchronous>, transform_indices = @transform_6, window_bounds = array<i64: 12, 1>}, {transform_indices = @transform_7, window_bounds = array<i64: 12, 128>}]} {
    %c0 = arith.constant 0 : index
    %c0_0 = arith.constant 0 : index
    %0 = vector.load %arg1[%c0, %c0_0] : memref<8x128xbf16, #tpu.memory_space<vmem>>, vector<8x128xbf16>
    %c0_1 = arith.constant 0 : index
    %c0_2 = arith.constant 0 : index
    %1 = vector.load %arg2[%c0_1, %c0_2] : memref<24x8xbf16, #tpu.memory_space<vmem>>, vector<24x8xbf16>
    %c0_3 = arith.constant 0 : index
    %c0_4 = arith.constant 0 : index
    %2 = vector.load %arg3[%c0_3, %c0_4] : memref<24x1xf32, #tpu.memory_space<vmem>>, vector<24x1xf32>
    %cst = arith.constant dense<0.000000e+00> : vector<24x128xf32>
    %3 = tpu.matmul %1, %0, %cst {dimension_numbers = #tpu.dot_dimension_numbers<[1], [0], [0], [1], [0, 0, 1, 1], [], []>} : vector<24x8xbf16>, vector<8x128xbf16>, vector<24x128xf32> -> vector<24x128xf32>
    %4 = vector.broadcast %2 : vector<24x1xf32> to vector<24x128xf32>
    %5 = arith.addf %3, %4 : vector<24x128xf32>
    %cst_5 = arith.constant 0.000000e+00 : f32
    %6 = vector.broadcast %cst_5 : f32 to vector<24x128xf32>
    %7 = arith.maximumf %5, %6 : vector<24x128xf32>
    %8 = arith.truncf %7 : vector<24x128xf32> to vector<24x128xbf16>
    %c0_6 = arith.constant 0 : index
    %c0_7 = arith.constant 0 : index
    %9 = vector.load %arg4[%c0_6, %c0_7] : memref<18x24xbf16, #tpu.memory_space<vmem>>, vector<18x24xbf16>
    %c0_8 = arith.constant 0 : index
    %c0_9 = arith.constant 0 : index
    %10 = vector.load %arg5[%c0_8, %c0_9] : memref<18x1xf32, #tpu.memory_space<vmem>>, vector<18x1xf32>
    %cst_10 = arith.constant dense<0.000000e+00> : vector<18x128xf32>
    %11 = tpu.matmul %9, %8, %cst_10 {dimension_numbers = #tpu.dot_dimension_numbers<[1], [0], [0], [1], [0, 0, 1, 1], [], []>} : vector<18x24xbf16>, vector<24x128xbf16>, vector<18x128xf32> -> vector<18x128xf32>
    %12 = vector.broadcast %10 : vector<18x1xf32> to vector<18x128xf32>
    %13 = arith.addf %11, %12 : vector<18x128xf32>
    %cst_11 = arith.constant 0.000000e+00 : f32
    %14 = vector.broadcast %cst_11 : f32 to vector<18x128xf32>
    %15 = arith.maximumf %13, %14 : vector<18x128xf32>
    %16 = arith.truncf %15 : vector<18x128xf32> to vector<18x128xbf16>
    %c0_12 = arith.constant 0 : index
    %c0_13 = arith.constant 0 : index
    %17 = vector.load %arg6[%c0_12, %c0_13] : memref<12x18xbf16, #tpu.memory_space<vmem>>, vector<12x18xbf16>
    %c0_14 = arith.constant 0 : index
    %c0_15 = arith.constant 0 : index
    %18 = vector.load %arg7[%c0_14, %c0_15] : memref<12x1xf32, #tpu.memory_space<vmem>>, vector<12x1xf32>
    %cst_16 = arith.constant dense<0.000000e+00> : vector<12x128xf32>
    %19 = tpu.matmul %17, %16, %cst_16 {dimension_numbers = #tpu.dot_dimension_numbers<[1], [0], [0], [1], [0, 0, 1, 1], [], []>} : vector<12x18xbf16>, vector<18x128xbf16>, vector<12x128xf32> -> vector<12x128xf32>
    %20 = vector.broadcast %18 : vector<12x1xf32> to vector<12x128xf32>
    %21 = arith.addf %19, %20 : vector<12x128xf32>
    %c0_17 = arith.constant 0 : index
    %c0_18 = arith.constant 0 : index
    %22 = vector.load %arg8[%c0_17, %c0_18] : memref<12x128xf32, #tpu.memory_space<vmem>>, vector<12x128xf32>
    tpu.vector_store %arg8[%c0_17, %c0_18], %21 {strides = array<i32>} : memref<12x128xf32, #tpu.memory_space<vmem>>, vector<12x128xf32>,
    return
  }
  func.func @transform_0(%arg0: i32) -> (i32, i32) {
    %c0_i32 = arith.constant 0 : i32
    %c0_i32_0 = arith.constant 0 : i32
    return %c0_i32, %arg0 : i32, i32
  }
  func.func @transform_1(%arg0: i32) -> (i32, i32) {
    %c0_i32 = arith.constant 0 : i32
    %c0_i32_0 = arith.constant 0 : i32
    %c0_i32_1 = arith.constant 0 : i32
    return %c0_i32, %c0_i32_0 : i32, i32
  }
  func.func @transform_2(%arg0: i32) -> (i32, i32) {
    %c0_i32 = arith.constant 0 : i32
    %c0_i32_0 = arith.constant 0 : i32
    %c0_i32_1 = arith.constant 0 : i32
    return %c0_i32, %c0_i32_0 : i32, i32
  }
  func.func @transform_3(%arg0: i32) -> (i32, i32) {
    %c0_i32 = arith.constant 0 : i32
    %c0_i32_0 = arith.constant 0 : i32
    %c0_i32_1 = arith.constant 0 : i32
    return %c0_i32, %c0_i32_0 : i32, i32
  }
  func.func @transform_4(%arg0: i32) -> (i32, i32) {
    %c0_i32 = arith.constant 0 : i32
    %c0_i32_0 = arith.constant 0 : i32
    %c0_i32_1 = arith.constant 0 : i32
    return %c0_i32, %c0_i32_0 : i32, i32
  }
  func.func @transform_5(%arg0: i32) -> (i32, i32) {
    %c0_i32 = arith.constant 0 : i32
    %c0_i32_0 = arith.constant 0 : i32
    %c0_i32_1 = arith.constant 0 : i32
    return %c0_i32, %c0_i32_0 : i32, i32
  }
  func.func @transform_6(%arg0: i32) -> (i32, i32) {
    %c0_i32 = arith.constant 0 : i32
    %c0_i32_0 = arith.constant 0 : i32
    %c0_i32_1 = arith.constant 0 : i32
    return %c0_i32, %c0_i32_0 : i32, i32
  }
  func.func @transform_7(%arg0: i32) -> (i32, i32) {
    %c0_i32 = arith.constant 0 : i32
    %c0_i32_0 = arith.constant 0 : i32
    return %c0_i32, %arg0 : i32, i32
  }
}

module attributes {stable_mosaic.version = 11 : i64} {
  func.func @kernel(%arg0: i32, %arg1: memref<8x128xbf16, #tpu.memory_space<vmem>>, %arg2: memref<24x8xbf16, #tpu.memory_space<vmem>>, %arg3: memref<24x1xf32, #tpu.memory_space<vmem>>, %arg4: memref<18x24xbf16, #tpu.memory_space<vmem>>, %arg5: memref<18x1xf32, #tpu.memory_space<vmem>>, %arg6: memref<12x18xbf16, #tpu.memory_space<vmem>>, %arg7: memref<12x1xf32, #tpu.memory_space<vmem>>, %arg8: memref<12x128xf32, #tpu.memory_space<vmem>>) attributes {dimension_semantics = [#tpu.dimension_semantics<parallel>], iteration_bounds = array<i64: 1>, scalar_prefetch = 0 : i64, scratch_operands = 0 : i64, tpu.core_type = #tpu.core_type<tc>, window_params = [{transform_indices = @transform_0, window_bounds = array<i64: 8, 128>}, {pipeline_mode = #tpu.pipeline_mode<synchronous>, transform_indices = @transform_1, window_bounds = array<i64: 24, 8>}, {pipeline_mode = #tpu.pipeline_mode<synchronous>, transform_indices = @transform_2, window_bounds = array<i64: 24, 1>}, {pipeline_mode = #tpu.pipeline_mode<synchronous>, transform_indices = @transform_3, window_bounds = array<i64: 18, 24>}, {pipeline_mode = #tpu.pipeline_mode<synchronous>, transform_indices = @transform_4, window_bounds = array<i64: 18, 1>}, {pipeline_mode = #tpu.pipeline_mode<synchronous>, transform_indices = @transform_5, window_bounds = array<i64: 12, 18>}, {pipeline_mode = #tpu.pipeline_mode<synchronous>, transform_indices = @transform_6, window_bounds = array<i64: 12, 1>}, {transform_indices = @transform_7, window_bounds = array<i64: 12, 128>}]} {
    %c0 = arith.constant 0 : index
    %c0_0 = arith.constant 0 : index
    %0 = vector.load %arg1[%c0, %c0_0] : memref<8x128xbf16, #tpu.memory_space<vmem>>, vector<8x128xbf16>
    %c0_1 = arith.constant 0 : index
    %c0_2 = arith.constant 0 : index
    %1 = vector.load %arg2[%c0_1, %c0_2] : memref<24x8xbf16, #tpu.memory_space<vmem>>, vector<24x8xbf16>
    %c0_3 = arith.constant 0 : index
    %c0_4 = arith.constant 0 : index
    %2 = vector.load %arg3[%c0_3, %c0_4] : memref<24x1xf32, #tpu.memory_space<vmem>>, vector<24x1xf32>
    %cst = arith.constant dense<0.000000e+00> : vector<24x128xf32>
    %3 = tpu.matmul %1, %0, %cst {dimension_numbers = #tpu.dot_dimension_numbers<[1], [0], [0], [1], [0, 0, 1, 1], [], []>} : vector<24x8xbf16>, vector<8x128xbf16>, vector<24x128xf32> -> vector<24x128xf32>
    %4 = vector.broadcast %2 : vector<24x1xf32> to vector<24x128xf32>
    %5 = arith.addf %3, %4 : vector<24x128xf32>
    %cst_5 = arith.constant 0.000000e+00 : f32
    %6 = vector.broadcast %cst_5 : f32 to vector<24x128xf32>
    %7 = arith.maximumf %5, %6 : vector<24x128xf32>
    %8 = arith.truncf %7 : vector<24x128xf32> to vector<24x128xbf16>
    %c0_6 = arith.constant 0 : index
    %c0_7 = arith.constant 0 : index
    %9 = vector.load %arg4[%c0_6, %c0_7] : memref<18x24xbf16, #tpu.memory_space<vmem>>, vector<18x24xbf16>
    %c0_8 = arith.constant 0 : index
    %c0_9 = arith.constant 0 : index
    %10 = vector.load %arg5[%c0_8, %c0_9] : memref<18x1xf32, #tpu.memory_space<vmem>>, vector<18x1xf32>
    %cst_10 = arith.constant dense<0.000000e+00> : vector<18x128xf32>
    %11 = tpu.matmul %9, %8, %cst_10 {dimension_numbers = #tpu.dot_dimension_numbers<[1], [0], [0], [1], [0, 0, 1, 1], [], []>} : vector<18x24xbf16>, vector<24x128xbf16>, vector<18x128xf32> -> vector<18x128xf32>
    %12 = vector.broadcast %10 : vector<18x1xf32> to vector<18x128xf32>
    %13 = arith.addf %11, %12 : vector<18x128xf32>
    %cst_11 = arith.constant 0.000000e+00 : f32
    %14 = vector.broadcast %cst_11 : f32 to vector<18x128xf32>
    %15 = arith.maximumf %13, %14 : vector<18x128xf32>
    %16 = arith.truncf %15 : vector<18x128xf32> to vector<18x128xbf16>
    %c0_12 = arith.constant 0 : index
    %c0_13 = arith.constant 0 : index
    %17 = vector.load %arg6[%c0_12, %c0_13] : memref<12x18xbf16, #tpu.memory_space<vmem>>, vector<12x18xbf16>
    %c0_14 = arith.constant 0 : index
    %c0_15 = arith.constant 0 : index
    %18 = vector.load %arg7[%c0_14, %c0_15] : memref<12x1xf32, #tpu.memory_space<vmem>>, vector<12x1xf32>
    %cst_16 = arith.constant dense<0.000000e+00> : vector<12x128xf32>
    %19 = tpu.matmul %17, %16, %cst_16 {dimension_numbers = #tpu.dot_dimension_numbers<[1], [0], [0], [1], [0, 0, 1, 1], [], []>} : vector<12x18xbf16>, vector<18x128xbf16>, vector<12x128xf32> -> vector<12x128xf32>
    %20 = vector.broadcast %18 : vector<12x1xf32> to vector<12x128xf32>
    %21 = arith.addf %19, %20 : vector<12x128xf32>
    %c0_17 = arith.constant 0 : index
    %c0_18 = arith.constant 0 : index
    %22 = vector.load %arg8[%c0_17, %c0_18] : memref<12x128xf32, #tpu.memory_space<vmem>>, vector<12x128xf32>
    tpu.vector_store %arg8[%c0_17, %c0_18], %21 {strides = array<i32>} : memref<12x128xf32, #tpu.memory_space<vmem>>, vector<12x128xf32>,
    return
  }
  func.func @transform_0(%arg0: i32) -> (i32, i32) {
    %c0_i32 = arith.constant 0 : i32
    %c0_i32_0 = arith.constant 0 : i32
    return %c0_i32, %arg0 : i32, i32
  }
  func.func @transform_1(%arg0: i32) -> (i32, i32) {
    %c0_i32 = arith.constant 0 : i32
    %c0_i32_0 = arith.constant 0 : i32
    %c0_i32_1 = arith.constant 0 : i32
    return %c0_i32, %c0_i32_0 : i32, i32
  }
  func.func @transform_2(%arg0: i32) -> (i32, i32) {
    %c0_i32 = arith.constant 0 : i32
    %c0_i32_0 = arith.constant 0 : i32
    %c0_i32_1 = arith.constant 0 : i32
    return %c0_i32, %c0_i32_0 : i32, i32
  }
  func.func @transform_3(%arg0: i32) -> (i32, i32) {
    %c0_i32 = arith.constant 0 : i32
    %c0_i32_0 = arith.constant 0 : i32
    %c0_i32_1 = arith.constant 0 : i32
    return %c0_i32, %c0_i32_0 : i32, i32
  }
  func.func @transform_4(%arg0: i32) -> (i32, i32) {
    %c0_i32 = arith.constant 0 : i32
    %c0_i32_0 = arith.constant 0 : i32
    %c0_i32_1 = arith.constant 0 : i32
    return %c0_i32, %c0_i32_0 : i32, i32
  }
  func.func @transform_5(%arg0: i32) -> (i32, i32) {
    %c0_i32 = arith.constant 0 : i32
    %c0_i32_0 = arith.constant 0 : i32
    %c0_i32_1 = arith.constant 0 : i32
    return %c0_i32, %c0_i32_0 : i32, i32
  }
  func.func @transform_6(%arg0: i32) -> (i32, i32) {
    %c0_i32 = arith.constant 0 : i32
    %c0_i32_0 = arith.constant 0 : i32
    %c0_i32_1 = arith.constant 0 : i32
    return %c0_i32, %c0_i32_0 : i32, i32
  }
  func.func @transform_7(%arg0: i32) -> (i32, i32) {
    %c0_i32 = arith.constant 0 : i32
    %c0_i32_0 = arith.constant 0 : i32
    return %c0_i32, %arg0 : i32, i32
  }
}

</mosaic_0001>

<bundles_post_ra>
// kernel: varlen_mlp_up_pallas.1
= control target key start
LH: loop header
LB: loop body
LE: loop exit
PB: predicated region body
PF: predicated region fallthrough
CT: control target
= control target key end

     0   :  { %vm64_vm0 = vcmask 1043456   ;;  %vm57_vm1 = vcmask 64512   ;;  %v341_v1 = vmov 0   ;;  %vm150_vm2 = vcmask 195584   ;;  %s440_s0 = inlined_call_operand.vmem [shape: bf16[8,128], index: 0, kind: input, shape index: {}]   ;;  %s441_s1 = inlined_call_operand.vmem [shape: bf16[24,8], index: 1, kind: input, shape index: {}]   ;;  %s442_s2 = inlined_call_operand.vmem [shape: f32[24,1], index: 2, kind: input, shape index: {}]   ;;  %s443_s4 = inlined_call_operand.vmem [shape: f32[18,1], index: 4, kind: input, shape index: {}]   ;;  %s444_s6 = inlined_call_operand.vmem [shape: f32[12,1], index: 6, kind: input, shape index: {}]   ;;  %s445_s3 = inlined_call_operand.vmem [shape: bf16[18,24], index: 3, kind: input, shape index: {}]   ;;  %s446_s5 = inlined_call_operand.vmem [shape: bf16[12,18], index: 5, kind: input, shape index: {}]   ;;  %s447_s7 = inlined_call_operand.vmem [shape: f32[12,128], index: 7, kind: output, shape index: {}]  }
   0x1   :  { %v27_v0 = vld [vmem:[%s440_s0] sm:$0xf]  ;;  %334 = vset.pattern.permute.xlu0 %v341_v1  ;;  %335 = vset.pattern.permute.xlu1 %v341_v1  ;;  %v337_v4 = vld [vmem:[%s441_s1 + $0x8] ss:$0 sps:$4 sm:$0xff]   ;;  %v33_v6 = vld [vmem:[%s442_s2 + $0x10] sm:$0xff]  ;;  %v342_v31 = vmov 0.0  }
   0x2   :  { %329 = vmatprep.subr.msk.bf16.mxu0 %vm64_vm0, %v27_v0  ;;  %v66_v2 = vsel %vm64_vm0, %v27_v0, 0  ;;  %v336_v3 = vld [vmem:[%s441_s1] sm:$0xff]   ;;  %v32_v7 = vld [vmem:[%s442_s2 + $0x8] sm:$0xff]  ;;  %46 = vperm.xlu1 %335, %v33_v6   ;;  %v126_v10 = vld [vmem:[%s443_s4 + $0x10] sm:$0x3]  ;;  %vm343_vm3 = vmmov 0  }
   0x3   :  { %308 = vmatpush3.bf16.msra.mxu0 %v66_v2  ;;  %v31_v5 = vld [vmem:[%s442_s2] sm:$0xff]  ;;  %309 = vmatprep.mubr.msk.bf16.mxu0 %vm57_vm1, %v336_v3  ;;  %v125_v9 = vld [vmem:[%s443_s4 + $0x8] sm:$0xff]  ;;  %vm236_vm4 = vcmask 1040384   ;;  %vm232_vm5 = vcmask 146432  }
   0x4   :  { %36 = vperm.xlu0 %334, %v31_v5   ;;  %v124_v8 = vld [vmem:[%s443_s4] sm:$0xff]  ;;  %v216_v12 = vld [vmem:[%s444_s6 + $0x8] sm:$0xf]  ;;  %321 = vmatprep.subr.bf16.mxu0 %v342_v31 }
   0x5   :  { %v215_v11 = vld [vmem:[%s444_s6] sm:$0xff]  ;;  %v339_v30 = vld [vmem:[%s445_s3 + $0x8] ss:$0 sps:$4 sm:$0x11]  }
   0x6   :  { %310 = vmatmul.mubr.msk.bf16.vlgmr.msra.gmra.mrb[0].mxu0 %vm57_vm1, %v337_v4  ;;  %129 = vperm.xlu1 %335, %v124_v8   ;;  %v338_v13 = vld [vmem:[%s445_s3] sm:$0xff]  }
   0x7   :  { %317 = vmatprep.mubr.msk.bf16.mxu1 %vm150_vm2, %v338_v13  ;;  %325 = vmatprep.mubr.msk.bf16.mxu0 %vm343_vm3, %v342_v31  ;;  %v340_v48 = vld [vmem:[%s446_s5] sm:$0x3f]  }
   0x8   :  { %41 = vperm.xlu0 %334, %v32_v7  }
   0xa   :  { %139 = vperm.xlu1 %335, %v126_v10  }
   0xc   :  { %134 = vperm.xlu0 %334, %v125_v9  }
   0xe   :  { %224 = vperm.xlu1 %335, %v216_v12  }
  0x10   :  { %219 = vperm.xlu0 %334, %v215_v11  }
  0x81   :  { %v47_v16 = vpop.permute.xlu1 %46 }
  0x83   :  { %v37_v14 = vpop.permute.xlu0 %36 }
  0x85   :  { %v130_v32 = vpop.permute.xlu1 %129 }
  0x87   :  { %v42_v21 = vpop.permute.xlu0 %41 }
  0x89   :  { %v140_v33 = vpop.permute.xlu1 %139 }
  0x8b   :  { %v135_v39 = vpop.permute.xlu0 %134 }
  0x8d   :  { %v225_v53 = vpop.permute.xlu1 %224 }
  0x8f   :  { %v220_v49 = vpop.permute.xlu0 %219 }
  0xd9   :  { %v311_v15 = vpop.f32.mrb[0].mxu0 }
  0xda   :  { %v102_v17 = vpop.f32.mrb[1].mxu0  ;;  %v111_v18 = vadd.f32 %v311_v15, %v47_v16 }
  0xdb   :  { %v103_v19 = vadd.f32 %v102_v17, %v37_v14  ;;  %v312_v20 = vpop.f32.mrb[2].mxu0 }
  0xdc   :  { %v105_v22 = vpop.f32.mrb[3].mxu0  ;;  %v118_v24 = vmax.f32 %v111_v18, 0.0 }
  0xdd   :  { %v106_v23 = vadd.f32 %v105_v22, %v42_v21  ;;  %v116_v25 = vmax.f32 %v103_v19, 0.0 }
  0xde   :  { %v120_v28 = vpack.c.bf16 %v118_v24, %v118_v24 }
  0xdf   :  { %v117_v26 = vmax.f32 %v106_v23, 0.0 }
  0xe0   :  { %v158_v29 = vsel %vm64_vm0, %v120_v28, 0 }
  0xe1   :  { %v119_v27 = vpack.c.bf16 %v117_v26, %v116_v25 }
  0xe3   :  { %313 = vmatprep.subr.bf16.mxu1 %v119_v27 }
  0xe4   :  { %314 = vmatpush3.bf16.msra.mxu1 %v119_v27 }
  0xe5   :  { %330 = vmatprep.subr.msk.bf16.mxu1 %vm64_vm0, %v120_v28 }
  0xe8   :  { %316 = vmatpush3.bf16.msra.mxu1 %v158_v29 }
  0xeb   :  { %318 = vmatmul.mubr.msk.bf16.vlgmr.msra.gmra.mrb[0].mxu1 %vm150_vm2, %v339_v30 }
 0x1be   :  { %v319_v34 = vpop.f32.mrb[0].mxu1 }
 0x1bf   :  { %v203_v35 = vadd.f32 %v319_v34, %v140_v33  ;;  %v194_v36 = vpop.f32.mrb[1].mxu1 }
 0x1c0   :  { %v195_v37 = vadd.f32 %v194_v36, %v130_v32  ;;  %v320_v38 = vpop.f32.mrb[2].mxu1 }
 0x1c1   :  { %v197_v40 = vpop.f32.mrb[3].mxu1  ;;  %v210_v42 = vmax.f32 %v203_v35, 0.0 }
 0x1c2   :  { %v198_v41 = vadd.f32 %v197_v40, %v135_v39  ;;  %v208_v43 = vmax.f32 %v195_v37, 0.0 }
 0x1c3   :  { %v212_v46 = vpack.c.bf16 %v210_v42, %v210_v42 }
 0x1c4   :  { %v209_v44 = vmax.f32 %v198_v41, 0.0 }
 0x1c5   :  { %v238_v47 = vsel %vm236_vm4, %v212_v46, 0 }
 0x1c6   :  { %v211_v45 = vpack.c.bf16 %v209_v44, %v208_v43 }
 0x1c8   :  { %322 = vmatpush3.bf16.msra.mxu0 %v211_v45 }
 0x1c9   :  { %323 = vmatprep.subr.bf16.mxu0 %v342_v31 }
 0x1cc   :  { %324 = vmatpush3.bf16.msra.mxu0 %v238_v47 }
 0x1cf   :  { %326 = vmatmul.mubr.msk.bf16.vlgmr.msra.gmra.mrb[4].mxu0 %vm232_vm5, %v340_v48 }
 0x2a2   :  { %v274_v50 = vpop.f32.mrb[4].mxu0 }
 0x2a3   :  { %v275_v51 = vadd.f32 %v274_v50, %v220_v49  ;;  %v327_v52 = vpop.f32.mrb[5].mxu0 }
 0x2a4   :  { %v277_v54 = vpop.f32.mrb[6].mxu0 }
 0x2a5   :  { %281 = vst [vmem:[%s447_s7] sm:$0xff] %v275_v51  ;;  %v278_v55 = vadd.f32 %v277_v54, %v225_v53  ;;  %v328_v56 = vpop.f32.mrb[7].mxu0 }
 0x2a7   :  { %282 = vst [vmem:[%s447_s7 + $0x8] sm:$0xf] %v278_v55 }

// kernel: varlen_mlp_up_pallas.1
= control target key start
LH: loop header
LB: loop body
LE: loop exit
PB: predicated region body
PF: predicated region fallthrough
CT: control target
= control target key end

     0   :  { %vm64_vm0 = vcmask 1043456   ;;  %vm57_vm1 = vcmask 64512   ;;  %v341_v1 = vmov 0   ;;  %vm150_vm2 = vcmask 195584   ;;  %s440_s0 = inlined_call_operand.vmem [shape: bf16[8,128], index: 0, kind: input, shape index: {}]   ;;  %s441_s1 = inlined_call_operand.vmem [shape: bf16[24,8], index: 1, kind: input, shape index: {}]   ;;  %s442_s2 = inlined_call_operand.vmem [shape: f32[24,1], index: 2, kind: input, shape index: {}]   ;;  %s443_s4 = inlined_call_operand.vmem [shape: f32[18,1], index: 4, kind: input, shape index: {}]   ;;  %s444_s6 = inlined_call_operand.vmem [shape: f32[12,1], index: 6, kind: input, shape index: {}]   ;;  %s445_s3 = inlined_call_operand.vmem [shape: bf16[18,24], index: 3, kind: input, shape index: {}]   ;;  %s446_s5 = inlined_call_operand.vmem [shape: bf16[12,18], index: 5, kind: input, shape index: {}]   ;;  %s447_s7 = inlined_call_operand.vmem [shape: f32[12,128], index: 7, kind: output, shape index: {}]  }
   0x1   :  { %v27_v0 = vld [vmem:[%s440_s0] sm:$0xf]  ;;  %334 = vset.pattern.permute.xlu0 %v341_v1  ;;  %335 = vset.pattern.permute.xlu1 %v341_v1  ;;  %v337_v4 = vld [vmem:[%s441_s1 + $0x8] ss:$0 sps:$4 sm:$0xff]   ;;  %v33_v6 = vld [vmem:[%s442_s2 + $0x10] sm:$0xff]  ;;  %v342_v31 = vmov 0.0  }
   0x2   :  { %329 = vmatprep.subr.msk.bf16.mxu0 %vm64_vm0, %v27_v0  ;;  %v66_v2 = vsel %vm64_vm0, %v27_v0, 0  ;;  %v336_v3 = vld [vmem:[%s441_s1] sm:$0xff]   ;;  %v32_v7 = vld [vmem:[%s442_s2 + $0x8] sm:$0xff]  ;;  %46 = vperm.xlu1 %335, %v33_v6   ;;  %v126_v10 = vld [vmem:[%s443_s4 + $0x10] sm:$0x3]  ;;  %vm343_vm3 = vmmov 0  }
   0x3   :  { %308 = vmatpush3.bf16.msra.mxu0 %v66_v2  ;;  %v31_v5 = vld [vmem:[%s442_s2] sm:$0xff]  ;;  %309 = vmatprep.mubr.msk.bf16.mxu0 %vm57_vm1, %v336_v3  ;;  %v125_v9 = vld [vmem:[%s443_s4 + $0x8] sm:$0xff]  ;;  %vm236_vm4 = vcmask 1040384   ;;  %vm232_vm5 = vcmask 146432  }
   0x4   :  { %36 = vperm.xlu0 %334, %v31_v5   ;;  %v124_v8 = vld [vmem:[%s443_s4] sm:$0xff]  ;;  %v216_v12 = vld [vmem:[%s444_s6 + $0x8] sm:$0xf]  ;;  %321 = vmatprep.subr.bf16.mxu0 %v342_v31 }
   0x5   :  { %v215_v11 = vld [vmem:[%s444_s6] sm:$0xff]  ;;  %v339_v30 = vld [vmem:[%s445_s3 + $0x8] ss:$0 sps:$4 sm:$0x11]  }
   0x6   :  { %310 = vmatmul.mubr.msk.bf16.vlgmr.msra.gmra.mrb[0].mxu0 %vm57_vm1, %v337_v4  ;;  %129 = vperm.xlu1 %335, %v124_v8   ;;  %v338_v13 = vld [vmem:[%s445_s3] sm:$0xff]  }
   0x7   :  { %317 = vmatprep.mubr.msk.bf16.mxu1 %vm150_vm2, %v338_v13  ;;  %325 = vmatprep.mubr.msk.bf16.mxu0 %vm343_vm3, %v342_v31  ;;  %v340_v48 = vld [vmem:[%s446_s5] sm:$0x3f]  }
   0x8   :  { %41 = vperm.xlu0 %334, %v32_v7  }
   0xa   :  { %139 = vperm.xlu1 %335, %v126_v10  }
   0xc   :  { %134 = vperm.xlu0 %334, %v125_v9  }
   0xe   :  { %224 = vperm.xlu1 %335, %v216_v12  }
  0x10   :  { %219 = vperm.xlu0 %334, %v215_v11  }
  0x81   :  { %v47_v16 = vpop.permute.xlu1 %46 }
  0x83   :  { %v37_v14 = vpop.permute.xlu0 %36 }
  0x85   :  { %v130_v32 = vpop.permute.xlu1 %129 }
  0x87   :  { %v42_v21 = vpop.permute.xlu0 %41 }
  0x89   :  { %v140_v33 = vpop.permute.xlu1 %139 }
  0x8b   :  { %v135_v39 = vpop.permute.xlu0 %134 }
  0x8d   :  { %v225_v53 = vpop.permute.xlu1 %224 }
  0x8f   :  { %v220_v49 = vpop.permute.xlu0 %219 }
  0xd9   :  { %v311_v15 = vpop.f32.mrb[0].mxu0 }
  0xda   :  { %v102_v17 = vpop.f32.mrb[1].mxu0  ;;  %v111_v18 = vadd.f32 %v311_v15, %v47_v16 }
  0xdb   :  { %v103_v19 = vadd.f32 %v102_v17, %v37_v14  ;;  %v312_v20 = vpop.f32.mrb[2].mxu0 }
  0xdc   :  { %v105_v22 = vpop.f32.mrb[3].mxu0  ;;  %v118_v24 = vmax.f32 %v111_v18, 0.0 }
  0xdd   :  { %v106_v23 = vadd.f32 %v105_v22, %v42_v21  ;;  %v116_v25 = vmax.f32 %v103_v19, 0.0 }
  0xde   :  { %v120_v28 = vpack.c.bf16 %v118_v24, %v118_v24 }
  0xdf   :  { %v117_v26 = vmax.f32 %v106_v23, 0.0 }
  0xe0   :  { %v158_v29 = vsel %vm64_vm0, %v120_v28, 0 }
  0xe1   :  { %v119_v27 = vpack.c.bf16 %v117_v26, %v116_v25 }
  0xe3   :  { %313 = vmatprep.subr.bf16.mxu1 %v119_v27 }
  0xe4   :  { %314 = vmatpush3.bf16.msra.mxu1 %v119_v27 }
  0xe5   :  { %330 = vmatprep.subr.msk.bf16.mxu1 %vm64_vm0, %v120_v28 }
  0xe8   :  { %316 = vmatpush3.bf16.msra.mxu1 %v158_v29 }
  0xeb   :  { %318 = vmatmul.mubr.msk.bf16.vlgmr.msra.gmra.mrb[0].mxu1 %vm150_vm2, %v339_v30 }
 0x1be   :  { %v319_v34 = vpop.f32.mrb[0].mxu1 }
 0x1bf   :  { %v203_v35 = vadd.f32 %v319_v34, %v140_v33  ;;  %v194_v36 = vpop.f32.mrb[1].mxu1 }
 0x1c0   :  { %v195_v37 = vadd.f32 %v194_v36, %v130_v32  ;;  %v320_v38 = vpop.f32.mrb[2].mxu1 }
 0x1c1   :  { %v197_v40 = vpop.f32.mrb[3].mxu1  ;;  %v210_v42 = vmax.f32 %v203_v35, 0.0 }
 0x1c2   :  { %v198_v41 = vadd.f32 %v197_v40, %v135_v39  ;;  %v208_v43 = vmax.f32 %v195_v37, 0.0 }
 0x1c3   :  { %v212_v46 = vpack.c.bf16 %v210_v42, %v210_v42 }
 0x1c4   :  { %v209_v44 = vmax.f32 %v198_v41, 0.0 }
 0x1c5   :  { %v238_v47 = vsel %vm236_vm4, %v212_v46, 0 }
 0x1c6   :  { %v211_v45 = vpack.c.bf16 %v209_v44, %v208_v43 }
 0x1c8   :  { %322 = vmatpush3.bf16.msra.mxu0 %v211_v45 }
 0x1c9   :  { %323 = vmatprep.subr.bf16.mxu0 %v342_v31 }
 0x1cc   :  { %324 = vmatpush3.bf16.msra.mxu0 %v238_v47 }
 0x1cf   :  { %326 = vmatmul.mubr.msk.bf16.vlgmr.msra.gmra.mrb[4].mxu0 %vm232_vm5, %v340_v48 }
 0x2a2   :  { %v274_v50 = vpop.f32.mrb[4].mxu0 }
 0x2a3   :  { %v275_v51 = vadd.f32 %v274_v50, %v220_v49  ;;  %v327_v52 = vpop.f32.mrb[5].mxu0 }
 0x2a4   :  { %v277_v54 = vpop.f32.mrb[6].mxu0 }
 0x2a5   :  { %281 = vst [vmem:[%s447_s7] sm:$0xff] %v275_v51  ;;  %v278_v55 = vadd.f32 %v277_v54, %v225_v53  ;;  %v328_v56 = vpop.f32.mrb[7].mxu0 }
 0x2a7   :  { %282 = vst [vmem:[%s447_s7 + $0x8] sm:$0xf] %v278_v55 }

</bundles_post_ra>
